<compile_context>
chip_gen: v6e
topology: v6e:2x2x1
jax: 0.10.0
libtpu: 0.0.40
codegen_flags: <defaults>
</compile_context>

<pallas_src>
import math

import jax
import jax.numpy as jnp
import numpy as np
from jax import lax
from jax.experimental import pallas as pl
from jax.experimental.pallas import tpu as pltpu


def conv2d_lrd_forward(x, dynamic_param, weight, bias, common_weight,
                       specific_weight):
    N, Cin, H, W = x.shape
    O, Cin_w, KH, KW = weight.shape
    R = common_weight.shape[0]
    D = dynamic_param.shape[0]
    del D  # only its length matters (num_domain)
    # torch.matmul validity constraints of the reference forward (see header).
    assert Cin_w == Cin and KH == R and O == R and Cin == O and W == Cin

    H_out, W_out = H - KH + 1, W - KW + 1
    K2 = 2 * KW
    hi = lax.Precision.HIGHEST

    # ---- hoisted, grid-invariant LRD weight math (tiny; plain JAX, runs once) ----
    st = jnp.einsum('rd,d->r', specific_weight, dynamic_param, precision=hi)   # [R]
    ccw = jnp.einsum('r,ocrk->ock', common_weight, weight, precision=hi)       # [O,Cin,KW]
    scw = jnp.einsum('r,ocrk->ock', st, weight, precision=hi)                  # [O,Cin,KW]
    ccb = jnp.einsum('o,o->', bias, common_weight, precision=hi)               # scalar
    scb = jnp.einsum('o,o->', bias, st, precision=hi)                          # scalar

    wcat = jnp.concatenate([ccw, scw], axis=-1)                                # [O,Cin,2KW]
    # Lane-dense LRD weight (layout plumbing in the wrapper): wl[w, c, k, h] = wcat[c, w, k]
    wl = jnp.broadcast_to(
        jnp.transpose(wcat, (1, 0, 2))[..., None].astype(jnp.float32),
        (W, O, K2, H))                                                         # ~1 KB
    # Pre-broadcast bias row for the fused LRD output: [2KW, H]
    lrd_bias = jnp.broadcast_to(
        jnp.concatenate([jnp.full((KW,), ccb), jnp.full((KW,), scb)])[:, None],
        (K2, H)).astype(jnp.float32)

    wconv_flat = weight.reshape(-1).astype(jnp.float32)    # [O*Cin*KH*KW] -> SMEM scalars
    bconv = bias.astype(jnp.float32)                       # [O]           -> SMEM scalars

    # Lane-dense input: put H (the only large axis) on lanes.
    x_t = jnp.transpose(x, (0, 1, 3, 2)).astype(jnp.float32)   # [N, C, W, H]

    def kernel(x_ref, wl_ref, lrdb_ref, wconv_sm, bconv_sm, feat_ref, lrd_ref):
        xb = x_ref[...]                                     # [N, C, W, H], one VMEM copy

        # ---- LRD: fused common+specific, one wide [N, C, 2KW, H] store ----
        lrd = jnp.broadcast_to(lrdb_ref[...], (N, Cin, K2, H))
        for w in range(W):                                  # K = W = Cin taps, VPU FMAs
            lrd = lrd + wl_ref[w] * xb[:, :, w:w + 1, :]
        lrd_ref[...] = lrd

        # ---- conv (VALID, stride 1): direct tap MACs on the VPU, NCWH-style output ----
        # Hoist the KH lane-shifted slabs of each (c, w) column; reuse across (o, j) taps.
        slabs = {}

        def slab(c, w, i):                                  # xb[:, c, w, i:i+H_out] -> [N, H_out]
            key = (c, w, i)
            if key not in slabs:
                slabs[key] = xb[:, c, w, i:i + H_out]
            return slabs[key]

        for o in range(O):
            for wo in range(W_out):
                acc = jnp.zeros((N, H_out), jnp.float32) + bconv_sm[o]
                for c in range(Cin):
                    for i in range(KH):
                        for j in range(KW):
                            tap = ((o * Cin + c) * KH + i) * KW + j
                            acc = acc + wconv_sm[tap] * slab(c, wo + j, i)
                # Write the accumulator straight into the output ref (no stack epilogue).
                feat_ref[:, o:o + 1, wo:wo + 1, :] = acc[:, None, None, :]

    vmem = pl.BlockSpec(memory_space=pltpu.MemorySpace.VMEM)
    smem = pl.BlockSpec(memory_space=pltpu.MemorySpace.SMEM)

    feat_t, lrd_t = pl.pallas_call(
        kernel,
        out_shape=(jax.ShapeDtypeStruct((N, O, W_out, H_out), jnp.float32),
                   jax.ShapeDtypeStruct((N, Cin, K2, H), jnp.float32)),
        # grid=() : single step, whole batch per invocation (tiny problem; step
        # overhead would dominate any finer grid).
        in_specs=[vmem, vmem, vmem, smem, smem],
        out_specs=(vmem, vmem),
    )(x_t, wl, lrd_bias, wconv_flat, bconv)

    # Back to the PyTorch layouts (cheap XLA transposes/slices outside the kernel).
    feature = jnp.transpose(feat_t, (0, 1, 3, 2))           # [N, O, H_out, W_out]
    lrd_full = jnp.transpose(lrd_t, (0, 1, 3, 2))           # [N, C, H, 2KW]
    common_feature = lrd_full[..., :KW]
    specific_feature = lrd_full[..., KW:]
    return feature, common_feature, specific_feature


if __name__ == "__main__":
    # Shapes constrained by the module's matmul semantics (see header comment).
    N, Cin, H, W = 2, 2, 16, 2           # x: NCHW, W must equal in_channels
    O, KH, KW = 2, 2, 2                  # out_channels == rank == KH
    R, D = 2, 3                          # rank (default) and num_domain

    key = jax.random.PRNGKey(0)
    k1, k2, k3, k4, k5, k6 = jax.random.split(key, 6)

    fan_in = Cin * KH * KW
    bound = 1.0 / math.sqrt(fan_in)      # kaiming_uniform(a=sqrt(5)) bound
    weight = jax.random.uniform(k1, (O, Cin, KH, KW), jnp.float32, -bound, bound)
    bias = jax.random.uniform(k2, (O,), jnp.float32, -bound, bound)
    common_weight = 0.1 * jax.random.normal(k3, (R,), jnp.float32)
    specific_weight = 0.1 * jax.random.normal(k4, (R, D), jnp.float32)

    x = jax.random.normal(k5, (N, Cin, H, W), jnp.float32)
    dynamic_param = jax.random.normal(k6, (D,), jnp.float32)

    fwd = jax.jit(conv2d_lrd_forward)
    feature, common_feature, specific_feature = fwd(
        x, dynamic_param, weight, bias, common_weight, specific_weight)
    jax.block_until_ready((feature, common_feature, specific_feature))

    # ---- pure-JAX reference check (f32 precision to match the in-kernel VPU math) ----
    hi = lax.Precision.HIGHEST
    feat_ref = lax.conv_general_dilated(
        x, weight, window_strides=(1, 1), padding='VALID',
        dimension_numbers=('NCHW', 'OIHW', 'NCHW'),
        precision=hi) + bias.reshape(1, O, 1, 1)
    st = jnp.einsum('rd,d->r', specific_weight, dynamic_param, precision=hi)
    ccw = jnp.einsum('r,ocrk->ock', common_weight, weight, precision=hi)
    scw = jnp.einsum('r,ocrk->ock', st, weight, precision=hi)
    common_ref = (jnp.einsum('nchw,cwk->nchk', x, ccw, precision=hi)
                  + jnp.einsum('o,o->', bias, common_weight, precision=hi))
    specific_ref = (jnp.einsum('nchw,cwk->nchk', x, scw, precision=hi)
                    + jnp.einsum('o,o->', bias, st, precision=hi))

    assert np.allclose(np.asarray(feature), np.asarray(feat_ref), atol=1e-4)
    assert np.allclose(np.asarray(common_feature), np.asarray(common_ref), atol=1e-4)
    assert np.allclose(np.asarray(specific_feature), np.asarray(specific_ref), atol=1e-4)

    print("KERNEL_OK")
</pallas_src>

<mosaic_0001>
module attributes {stable_mosaic.version = 11 : i64} {
  func.func @kernel(%arg0: memref<2x2x2x16xf32, #tpu.memory_space<vmem>>, %arg1: memref<2x2x4x16xf32, #tpu.memory_space<vmem>>, %arg2: memref<4x16xf32, #tpu.memory_space<vmem>>, %arg3: memref<16xf32, #tpu.memory_space<smem>>, %arg4: memref<2xf32, #tpu.memory_space<smem>>, %arg5: memref<2x2x1x15xf32, #tpu.memory_space<vmem>>, %arg6: memref<2x2x4x16xf32, #tpu.memory_space<vmem>>) attributes {dimension_semantics = [], scalar_prefetch = 0 : i64, scratch_operands = 0 : i64, tpu.core_type = #tpu.core_type<tc>} {
    %c0 = arith.constant 0 : index
    %c0_0 = arith.constant 0 : index
    %c0_1 = arith.constant 0 : index
    %c0_2 = arith.constant 0 : index
    %0 = vector.load %arg0[%c0, %c0_0, %c0_1, %c0_2] : memref<2x2x2x16xf32, #tpu.memory_space<vmem>>, vector<2x2x2x16xf32>
    %c0_3 = arith.constant 0 : index
    %c0_4 = arith.constant 0 : index
    %1 = vector.load %arg2[%c0_3, %c0_4] : memref<4x16xf32, #tpu.memory_space<vmem>>, vector<4x16xf32>
    %2 = vector.shape_cast %1 : vector<4x16xf32> to vector<1x1x4x16xf32>
    %3 = vector.broadcast %2 : vector<1x1x4x16xf32> to vector<2x2x4x16xf32>
    %c0_5 = arith.constant 0 : index
    %c0_6 = arith.constant 0 : index
    %c0_7 = arith.constant 0 : index
    %c0_8 = arith.constant 0 : index
    %4 = vector.load %arg1[%c0_5, %c0_6, %c0_7, %c0_8] : memref<2x2x4x16xf32, #tpu.memory_space<vmem>>, vector<1x2x4x16xf32>
    %5 = vector.shape_cast %4 : vector<1x2x4x16xf32> to vector<2x4x16xf32>
    %6 = vector.extract_strided_slice %0 {offsets = [0, 0, 0, 0], sizes = [2, 2, 1, 16], strides = [1, 1, 1, 1]} : vector<2x2x2x16xf32> to vector<2x2x1x16xf32>
    %7 = vector.shape_cast %5 : vector<2x4x16xf32> to vector<1x2x4x16xf32>
    %8 = vector.broadcast %7 : vector<1x2x4x16xf32> to vector<2x2x4x16xf32>
    %9 = vector.broadcast %6 : vector<2x2x1x16xf32> to vector<2x2x4x16xf32>
    %10 = arith.mulf %8, %9 : vector<2x2x4x16xf32>
    %11 = arith.addf %3, %10 : vector<2x2x4x16xf32>
    %c1 = arith.constant 1 : index
    %c0_9 = arith.constant 0 : index
    %c0_10 = arith.constant 0 : index
    %c0_11 = arith.constant 0 : index
    %12 = vector.load %arg1[%c1, %c0_9, %c0_10, %c0_11] : memref<2x2x4x16xf32, #tpu.memory_space<vmem>>, vector<1x2x4x16xf32>
    %13 = vector.shape_cast %12 : vector<1x2x4x16xf32> to vector<2x4x16xf32>
    %14 = vector.extract_strided_slice %0 {offsets = [0, 0, 1, 0], sizes = [2, 2, 1, 16], strides = [1, 1, 1, 1]} : vector<2x2x2x16xf32> to vector<2x2x1x16xf32>
    %15 = vector.shape_cast %13 : vector<2x4x16xf32> to vector<1x2x4x16xf32>
    %16 = vector.broadcast %15 : vector<1x2x4x16xf32> to vector<2x2x4x16xf32>
    %17 = vector.broadcast %14 : vector<2x2x1x16xf32> to vector<2x2x4x16xf32>
    %18 = arith.mulf %16, %17 : vector<2x2x4x16xf32>
    %19 = arith.addf %11, %18 : vector<2x2x4x16xf32>
    %c0_12 = arith.constant 0 : index
    %c0_13 = arith.constant 0 : index
    %c0_14 = arith.constant 0 : index
    %c0_15 = arith.constant 0 : index
    %20 = vector.load %arg6[%c0_12, %c0_13, %c0_14, %c0_15] : memref<2x2x4x16xf32, #tpu.memory_space<vmem>>, vector<2x2x4x16xf32>
    tpu.vector_store %arg6[%c0_12, %c0_13, %c0_14, %c0_15], %19 {strides = array<i32>} : memref<2x2x4x16xf32, #tpu.memory_space<vmem>>, vector<2x2x4x16xf32>,
    %cst = arith.constant 0.000000e+00 : f32
    %21 = vector.broadcast %cst : f32 to vector<2x15xf32>
    %c0_16 = arith.constant 0 : index
    %22 = memref.load %arg4[%c0_16] : memref<2xf32, #tpu.memory_space<smem>>
    %23 = vector.broadcast %22 : f32 to vector<2x15xf32>
    %24 = arith.addf %21, %23 : vector<2x15xf32>
    %c0_17 = arith.constant 0 : index
    %25 = memref.load %arg3[%c0_17] : memref<16xf32, #tpu.memory_space<smem>>
    %26 = vector.extract_strided_slice %0 {offsets = [0, 0, 0, 0], sizes = [2, 1, 1, 15], strides = [1, 1, 1, 1]} : vector<2x2x2x16xf32> to vector<2x1x1x15xf32>
    %27 = vector.shape_cast %26 : vector<2x1x1x15xf32> to vector<2x15xf32>
    %28 = vector.broadcast %25 : f32 to vector<2x15xf32>
    %29 = arith.mulf %28, %27 : vector<2x15xf32>
    %30 = arith.addf %24, %29 : vector<2x15xf32>
    %c1_18 = arith.constant 1 : index
    %31 = memref.load %arg3[%c1_18] : memref<16xf32, #tpu.memory_space<smem>>
    %32 = vector.extract_strided_slice %0 {offsets = [0, 0, 1, 0], sizes = [2, 1, 1, 15], strides = [1, 1, 1, 1]} : vector<2x2x2x16xf32> to vector<2x1x1x15xf32>
    %33 = vector.shape_cast %32 : vector<2x1x1x15xf32> to vector<2x15xf32>
    %34 = vector.broadcast %31 : f32 to vector<2x15xf32>
    %35 = arith.mulf %34, %33 : vector<2x15xf32>
    %36 = arith.addf %30, %35 : vector<2x15xf32>
    %c2 = arith.constant 2 : index
    %37 = memref.load %arg3[%c2] : memref<16xf32, #tpu.memory_space<smem>>
    %38 = vector.extract_strided_slice %0 {offsets = [0, 0, 0, 1], sizes = [2, 1, 1, 15], strides = [1, 1, 1, 1]} : vector<2x2x2x16xf32> to vector<2x1x1x15xf32>
    %39 = vector.shape_cast %38 : vector<2x1x1x15xf32> to vector<2x15xf32>
    %40 = vector.broadcast %37 : f32 to vector<2x15xf32>
    %41 = arith.mulf %40, %39 : vector<2x15xf32>
    %42 = arith.addf %36, %41 : vector<2x15xf32>
    %c3 = arith.constant 3 : index
    %43 = memref.load %arg3[%c3] : memref<16xf32, #tpu.memory_space<smem>>
    %44 = vector.extract_strided_slice %0 {offsets = [0, 0, 1, 1], sizes = [2, 1, 1, 15], strides = [1, 1, 1, 1]} : vector<2x2x2x16xf32> to vector<2x1x1x15xf32>
    %45 = vector.shape_cast %44 : vector<2x1x1x15xf32> to vector<2x15xf32>
    %46 = vector.broadcast %43 : f32 to vector<2x15xf32>
    %47 = arith.mulf %46, %45 : vector<2x15xf32>
    %48 = arith.addf %42, %47 : vector<2x15xf32>
    %c4 = arith.constant 4 : index
    %49 = memref.load %arg3[%c4] : memref<16xf32, #tpu.memory_space<smem>>
    %50 = vector.extract_strided_slice %0 {offsets = [0, 1, 0, 0], sizes = [2, 1, 1, 15], strides = [1, 1, 1, 1]} : vector<2x2x2x16xf32> to vector<2x1x1x15xf32>
    %51 = vector.shape_cast %50 : vector<2x1x1x15xf32> to vector<2x15xf32>
    %52 = vector.broadcast %49 : f32 to vector<2x15xf32>
    %53 = arith.mulf %52, %51 : vector<2x15xf32>
    %54 = arith.addf %48, %53 : vector<2x15xf32>
    %c5 = arith.constant 5 : index
    %55 = memref.load %arg3[%c5] : memref<16xf32, #tpu.memory_space<smem>>
    %56 = vector.extract_strided_slice %0 {offsets = [0, 1, 1, 0], sizes = [2, 1, 1, 15], strides = [1, 1, 1, 1]} : vector<2x2x2x16xf32> to vector<2x1x1x15xf32>
    %57 = vector.shape_cast %56 : vector<2x1x1x15xf32> to vector<2x15xf32>
    %58 = vector.broadcast %55 : f32 to vector<2x15xf32>
    %59 = arith.mulf %58, %57 : vector<2x15xf32>
    %60 = arith.addf %54, %59 : vector<2x15xf32>
    %c6 = arith.constant 6 : index
    %61 = memref.load %arg3[%c6] : memref<16xf32, #tpu.memory_space<smem>>
    %62 = vector.extract_strided_slice %0 {offsets = [0, 1, 0, 1], sizes = [2, 1, 1, 15], strides = [1, 1, 1, 1]} : vector<2x2x2x16xf32> to vector<2x1x1x15xf32>
    %63 = vector.shape_cast %62 : vector<2x1x1x15xf32> to vector<2x15xf32>
    %64 = vector.broadcast %61 : f32 to vector<2x15xf32>
    %65 = arith.mulf %64, %63 : vector<2x15xf32>
    %66 = arith.addf %60, %65 : vector<2x15xf32>
    %c7 = arith.constant 7 : index
    %67 = memref.load %arg3[%c7] : memref<16xf32, #tpu.memory_space<smem>>
    %68 = vector.extract_strided_slice %0 {offsets = [0, 1, 1, 1], sizes = [2, 1, 1, 15], strides = [1, 1, 1, 1]} : vector<2x2x2x16xf32> to vector<2x1x1x15xf32>
    %69 = vector.shape_cast %68 : vector<2x1x1x15xf32> to vector<2x15xf32>
    %70 = vector.broadcast %67 : f32 to vector<2x15xf32>
    %71 = arith.mulf %70, %69 : vector<2x15xf32>
    %72 = arith.addf %66, %71 : vector<2x15xf32>
    %73 = vector.shape_cast %72 : vector<2x15xf32> to vector<2x1x1x15xf32>
    %c0_19 = arith.constant 0 : index
    %c0_20 = arith.constant 0 : index
    %c0_21 = arith.constant 0 : index
    %c0_22 = arith.constant 0 : index
    %74 = vector.load %arg5[%c0_19, %c0_20, %c0_21, %c0_22] : memref<2x2x1x15xf32, #tpu.memory_space<vmem>>, vector<2x1x1x15xf32>
    tpu.vector_store %arg5[%c0_19, %c0_20, %c0_21, %c0_22], %73 {strides = array<i32>} : memref<2x2x1x15xf32, #tpu.memory_space<vmem>>, vector<2x1x1x15xf32>,
    %cst_23 = arith.constant 0.000000e+00 : f32
    %75 = vector.broadcast %cst_23 : f32 to vector<2x15xf32>
    %c1_24 = arith.constant 1 : index
    %76 = memref.load %arg4[%c1_24] : memref<2xf32, #tpu.memory_space<smem>>
    %77 = vector.broadcast %76 : f32 to vector<2x15xf32>
    %78 = arith.addf %75, %77 : vector<2x15xf32>
    %c8 = arith.constant 8 : index
    %79 = memref.load %arg3[%c8] : memref<16xf32, #tpu.memory_space<smem>>
    %80 = vector.broadcast %79 : f32 to vector<2x15xf32>
    %81 = arith.mulf %80, %27 : vector<2x15xf32>
    %82 = arith.addf %78, %81 : vector<2x15xf32>
    %c9 = arith.constant 9 : index
    %83 = memref.load %arg3[%c9] : memref<16xf32, #tpu.memory_space<smem>>
    %84 = vector.broadcast %83 : f32 to vector<2x15xf32>
    %85 = arith.mulf %84, %33 : vector<2x15xf32>
    %86 = arith.addf %82, %85 : vector<2x15xf32>
    %c10 = arith.constant 10 : index
    %87 = memref.load %arg3[%c10] : memref<16xf32, #tpu.memory_space<smem>>
    %88 = vector.broadcast %87 : f32 to vector<2x15xf32>
    %89 = arith.mulf %88, %39 : vector<2x15xf32>
    %90 = arith.addf %86, %89 : vector<2x15xf32>
    %c11 = arith.constant 11 : index
    %91 = memref.load %arg3[%c11] : memref<16xf32, #tpu.memory_space<smem>>
    %92 = vector.broadcast %91 : f32 to vector<2x15xf32>
    %93 = arith.mulf %92, %45 : vector<2x15xf32>
    %94 = arith.addf %90, %93 : vector<2x15xf32>
    %c12 = arith.constant 12 : index
    %95 = memref.load %arg3[%c12] : memref<16xf32, #tpu.memory_space<smem>>
    %96 = vector.broadcast %95 : f32 to vector<2x15xf32>
    %97 = arith.mulf %96, %51 : vector<2x15xf32>
    %98 = arith.addf %94, %97 : vector<2x15xf32>
    %c13 = arith.constant 13 : index
    %99 = memref.load %arg3[%c13] : memref<16xf32, #tpu.memory_space<smem>>
    %100 = vector.broadcast %99 : f32 to vector<2x15xf32>
    %101 = arith.mulf %100, %57 : vector<2x15xf32>
    %102 = arith.addf %98, %101 : vector<2x15xf32>
    %c14 = arith.constant 14 : index
    %103 = memref.load %arg3[%c14] : memref<16xf32, #tpu.memory_space<smem>>
    %104 = vector.broadcast %103 : f32 to vector<2x15xf32>
    %105 = arith.mulf %104, %63 : vector<2x15xf32>
    %106 = arith.addf %102, %105 : vector<2x15xf32>
    %c15 = arith.constant 15 : index
    %107 = memref.load %arg3[%c15] : memref<16xf32, #tpu.memory_space<smem>>
    %108 = vector.broadcast %107 : f32 to vector<2x15xf32>
    %109 = arith.mulf %108, %69 : vector<2x15xf32>
    %110 = arith.addf %106, %109 : vector<2x15xf32>
    %111 = vector.shape_cast %110 : vector<2x15xf32> to vector<2x1x1x15xf32>
    %c0_25 = arith.constant 0 : index
    %c1_26 = arith.constant 1 : index
    %c0_27 = arith.constant 0 : index
    %c0_28 = arith.constant 0 : index
    %112 = vector.load %arg5[%c0_25, %c1_26, %c0_27, %c0_28] : memref<2x2x1x15xf32, #tpu.memory_space<vmem>>, vector<2x1x1x15xf32>
    tpu.vector_store %arg5[%c0_25, %c1_26, %c0_27, %c0_28], %111 {strides = array<i32>} : memref<2x2x1x15xf32, #tpu.memory_space<vmem>>, vector<2x1x1x15xf32>,
    return
  }
}

</mosaic_0001>

<bundles_post_ra>
// kernel: conv2d_lrd_forward.1
= control target key start
LH: loop header
LB: loop body
LE: loop exit
PB: predicated region body
PF: predicated region fallthrough
CT: control target
= control target key end

     0   :  { %12 = vsyncpa [#allocation4], 0  ;;  %s593_s0 = inlined_call_operand.vmem [shape: f32[2,2,2,16], index: 0, kind: input, shape index: {}]   ;;  %s594_s1 = inlined_call_operand.vmem [shape: f32[2,2,4,16], index: 1, kind: input, shape index: {}]   ;;  %s595_s2 = inlined_call_operand.vmem [shape: f32[4,16], index: 2, kind: input, shape index: {}]   ;;  %s596_s3 = inlined_call_operand.vmem [shape: f32[16], index: 3, kind: input, shape index: {}]   ;;  %s597_s4 = inlined_call_operand.vmem [shape: f32[2], index: 4, kind: input, shape index: {}]   ;;  %s598_s5 = inlined_call_operand.hbm [shape: f32[2,2,1,15], index: 5, kind: output, shape index: {0}]   ;;  %s599_s6 = inlined_call_operand.vmem [shape: f32[2,2,4,16], index: 6, kind: output, shape index: {1}]  }
   0x1   :  { %13 = vsyncpa [#allocation6], 0 }
   0x2   :  { %14 = vsyncpa [#allocation3], 0  ;;  %s27_s23 = sshll.u32 %s596_s3, 4  ;;  %s37_s26 = sshll.u32 %s597_s4, 4  ;;  %s28_s23 = int_to_ptr.vmem [resolvable:$true] %s27_s23  ;;  %s38_s26 = int_to_ptr.vmem [resolvable:$true] %s37_s26 }
   0x3   :  { %s361_s27 = scalar_lea.vmem %s28_s23, 16  ;;  %p366_p1 = scmp.lt.s32.totalorder %s28_s23, %s28_s23 }
   0x4   :  { %p362_p0 = scmp.ne.s32.totalorder %s28_s23, %s361_s27  ;;  %p367_p2 = scmp.lt.s32.totalorder %s361_s27, %s361_s27 }
   0x6   :  { %p368_p3 = por %p367_p2, %p366_p1 }
   0x8   :  { %p369_p4 = pnand %p368_p3, %p362_p0 }
   0xa   :  { %372 = shalt.err (!%p369_p4)
}
   0xb   :  { %s411_s28 = smov [#allocation2]   ;;  %s373_s29 = scalar_lea.vmem %s38_s26, 16 }
   0xc   :  { %30 = dma.vmem_to_smem %s28_s23, 16, %s411_s28, [#allocation4]  }
   0xd   :  { %p374_p5 = scmp.ne.s32.totalorder %s38_s26, %s373_s29  ;;  %p378_p6 = scmp.lt.s32.totalorder %s38_s26, %s38_s26 }
   0xe   :  { %p379_p7 = scmp.lt.s32.totalorder %s373_s29, %s373_s29 }
  0x10   :  { %p380_p8 = por %p379_p7, %p378_p6 }
  0x12   :  { %p381_p9 = pnand %p380_p8, %p374_p5 }
  0x14   :  { %384 = shalt.err (!%p381_p9)
}
  0x15   :  { %s412_s3 = smov [#allocation5]  }
  0x16   :  { %40 = dma.vmem_to_smem %s38_s26, 16, %s412_s3, [#allocation6]  }
  0x17   :  { %405 = dma.done.wait [#allocation4], 16  }
  0x18   :  { %406 = vsyncadd [#allocation4], 4294967280 }
  0x19   :  { %407 = dma.done.wait [#allocation6], 16  }
  0x1a   :  { %408 = vsyncadd [#allocation6], 4294967280 }
  0x1b   :  { %47 = sfence }
  0x1c   :  { %v55_v0 = vlaneseq  ;;  %s349_s4 = sld [smem:[#allocation2 + $0xa]]  ;;  %v461_v2 = vld [vmem:[%s593_s0] sm:$0x3]  ;;  %v466_v3 = vld [vmem:[%s593_s0 + $0x4] sm:$0x3]  ;;  %vm106_vm0 = vcmask 125952  }
  0x1d   :  { %s468_s10 = sld [smem:[#allocation2 + $0x2]]  ;;  %v53_v4 = vld [vmem:[%s594_s1] sm:$0xf]  ;;  %v337_v7 = vld [vmem:[%s594_s1 + $0x8] sm:$0xf]  ;;  %s413_s25 = smov 127  }
  0x1e   :  { %v56_v1 = vshrl.u32 %v55_v0, 7  ;;  %s473_s13 = sld [smem:[#allocation2 + $0x3]]  ;;  %v487_v12 = vld [vmem:[%s593_s0 + $0x6] sm:$0x3]  ;;  %v492_v13 = vld [vmem:[%s593_s0 + $0x2] sm:$0x3] }
  0x1f   :  { %s478_s16 = sld [smem:[#allocation2 + $0xb]]  ;;  %v52_v14 = vld [vmem:[%s595_s2] sm:$0xf]  ;;  %v54_v23 = vld [vmem:[%s594_s1 + $0x4] sm:$0xf]  ;;  %vm210_vm1 = vcmask 114688  }
  0x20   :  { %v57_v5 = vsub.s32 0, %v56_v1  ;;  %v84_v6 = vsub.s32 1, %v56_v1  ;;  %v338_v24 = vld [vmem:[%s594_s1 + $0xc] sm:$0xf]  ;;  %s344_s1 = sld [smem:[#allocation2 + $0x6]]  ;;  %s414_s20 = smov [#allocation7]  }
  0x21   :  { %s353_s3 = sld [smem:[#allocation2 + $0xe]]  ;;  %s320_s21 = sshll.u32 %s414_s20, 4  ;;  %s321_s21 = int_to_ptr.vmem [resolvable:$true] %s320_s21 }
  0x22   :  { %v66_v8 = vrot.slane %v466_v3, %v57_v5  ;;  %v93_v9 = vrot.slane %v466_v3, %v84_v6  ;;  %v58_v10 = vrot.slane %v461_v2, %v57_v5  ;;  %v85_v11 = vrot.slane %v461_v2, %v84_v6  ;;  %s339_s11 = sld [smem:[#allocation2 + $0x1]]  ;;  %s385_s22 = scalar_lea.vmem %s321_s21, 64 }
  0x23   :  { %v70_v15 = vrot.slane %v487_v12, %v57_v5  ;;  %v97_v16 = vrot.slane %v487_v12, %v84_v6  ;;  %v62_v17 = vrot.slane %v492_v13, %v57_v5  ;;  %v89_v18 = vrot.slane %v492_v13, %v84_v6  ;;  %s347_s12 = sld [smem:[#allocation2 + $0x8]]  ;;  %p386_p10 = scmp.ne.s32.totalorder %s321_s21, %s385_s22 }
  0x24   :  { %v73_v19 = vmul.f32 %v66_v8, %v53_v4  ;;  %v100_v20 = vmul.f32 %v337_v7, %v93_v9  ;;  %v235_v21 = vstv %s349_s4  ;;  %v71_v22 = vmul.f32 %v58_v10, %v53_v4  ;;  %s345_s4 = sld [smem:[#allocation2 + $0x7]]  ;;  %p390_p11 = scmp.lt.s32.totalorder %s321_s21, %s321_s21 }
  0x25   :  { %v236_v25 = vmul.f32 %v235_v21, %v461_v2  ;;  %v237_v26 = vmul.f32 %v235_v21, %v466_v3  ;;  %v98_v27 = vmul.f32 %v337_v7, %v85_v11  ;;  %v133_v28 = vstv %s468_s10  ;;  %s354_s10 = sld [smem:[#allocation2 + $0xf]]  ;;  %p391_p12 = scmp.lt.s32.totalorder %s385_s22, %s385_s22 }
  0x26   :  { %v77_v29 = vadd.f32 %v73_v19, %v52_v14  ;;  %v75_v30 = vadd.f32 %v71_v22, %v52_v14  ;;  %v134_v31 = vmul.f32 %v133_v28, %v461_v2  ;;  %v135_v32 = vmul.f32 %v133_v28, %v466_v3  ;;  %s111_s14 = sld [smem:[#allocation5]] }
  0x27   :  { %240 = vrot.lane.b32.xlu1 %v236_v25, %s413_s25  ;;  %v147_v33 = vstv %s473_s13  ;;  %v249_v34 = vstv %s478_s16  ;;  %v74_v35 = vmul.f32 %v70_v15, %v54_v23  ;;  %v101_v36 = vmul.f32 %v338_v24, %v97_v16  ;;  %s348_s13 = sld [smem:[#allocation2 + $0x9]]  ;;  %p392_p13 = por %p391_p12, %p390_p11 }
  0x28   :  { %v104_v37 = vadd.f32 %v100_v20, %v77_v29  ;;  %v102_v38 = vadd.f32 %v98_v27, %v75_v30  ;;  %138 = vrot.lane.b32.xlu0 %v134_v31, %s413_s25  ;;  %v149_v39 = vmul.f32 %v147_v33, %v466_v3  ;;  %v148_v40 = vmul.f32 %v147_v33, %v461_v2  ;;  %s346_s15 = sld [smem:[#allocation5 + $0x1]] }
  0x29   :  { %v78_v41 = vadd.f32 %v74_v35, %v52_v14  ;;  %v72_v42 = vmul.f32 %v62_v17, %v54_v23  ;;  %v251_v44 = vmul.f32 %v249_v34, %v466_v3  ;;  %v99_v46 = vmul.f32 %v338_v24, %v89_v18  ;;  %s558_s16 = sld [smem:[#allocation2 + $0x5]]  ;;  %p393_p0 = pnand %p392_p13, %p386_p10 }
  0x2a   :  { %109 = vst.msk [vmem:[%s599_s6 + $0x8] sm:$0xf] %vm106_vm0, %v104_v37  ;;  %107 = vst.msk [vmem:[%s599_s6] sm:$0xf] %vm106_vm0, %v102_v38  ;;  %v153_v43 = vrot.slane %v149_v39, 1  ;;  %v152_v47 = vrot.slane %v148_v40, 1  ;;  %v250_v48 = vmul.f32 %v249_v34, %v461_v2  ;;  %v181_v53 = vstv %s344_s1 }
  0x2b   :  { %242 = vrot.lane.b32.xlu1 %v237_v26, %s413_s25  ;;  %v105_v45 = vadd.f32 %v101_v36, %v78_v41  ;;  %v76_v49 = vadd.f32 %v72_v42, %v52_v14  ;;  %v255_v51 = vrot.slane %v251_v44, 1  ;;  %v183_v54 = vmul.f32 %v181_v53, %v487_v12  ;;  %s564_s17 = sld [smem:[#allocation2 + $0x4]] }
  0x2c   :  { %140 = vrot.lane.b32.xlu0 %v135_v32, %s413_s25  ;;  %v254_v52 = vrot.slane %v250_v48, 1  ;;  %v182_v55 = vmul.f32 %v181_v53, %v492_v13  ;;  %v283_v56 = vstv %s353_s3  ;;  %v195_v57 = vstv %s345_s4  ;;  %s566_s18 = sld [smem:[#allocation2 + $0xd]] }
  0x2d   :  { %110 = vst.msk [vmem:[%s599_s6 + $0xc] sm:$0xf] %vm106_vm0, %v105_v45  ;;  %v103_v50 = vadd.f32 %v99_v46, %v76_v49  ;;  %v285_v58 = vmul.f32 %v283_v56, %v487_v12  ;;  %v197_v59 = vmul.f32 %v195_v57, %v487_v12  ;;  %v284_v60 = vmul.f32 %v283_v56, %v492_v13  ;;  %s572_s19 = sld [smem:[#allocation2 + $0xc]] }
  0x2e   :  { %v196_v61 = vmul.f32 %v195_v57, %v492_v13  ;;  %v297_v62 = vstv %s354_s10  ;;  %v121_v8 = vstv %s339_s11  ;;  %v217_v15 = vstv %s347_s12 }
  0x2f   :  { %156 = vrot.lane.b32.xlu1 %v153_v43, %s413_s25  ;;  %108 = vst.msk [vmem:[%s599_s6 + $0x4] sm:$0xf] %vm106_vm0, %v103_v50  ;;  %v201_v63 = vrot.slane %v197_v59, 1  ;;  %v299_v0 = vmul.f32 %v297_v62, %v487_v12  ;;  %v298_v4 = vmul.f32 %v297_v62, %v492_v13  ;;  %s114_s6 = sld [smem:[#allocation2]]  ;;  %v123_v10 = vmul.f32 %v121_v8, %v466_v3 }
  0x30   :  { %154 = vrot.lane.b32.xlu0 %v152_v47, %s413_s25  ;;  %v200_v1 = vrot.slane %v196_v61, 1  ;;  %v122_v14 = vmul.f32 %v121_v8, %v461_v2  ;;  %v223_v16 = vstv %s348_s13  ;;  %v112_v17 = vstv %s111_s14 }
  0x31   :  { %v303_v5 = vrot.slane %v299_v0, 1  ;;  %v302_v6 = vrot.slane %v298_v4, 1  ;;  %v219_v18 = vmul.f32 %v217_v15, %v466_v3  ;;  %v225_v19 = vmul.f32 %v223_v16, %v466_v3 }
  0x32   :  { %v127_v21 = vrot.slane %v123_v10, 1  ;;  %v218_v23 = vmul.f32 %v217_v15, %v461_v2  ;;  %v224_v24 = vmul.f32 %v223_v16, %v461_v2  ;;  %v126_v26 = vrot.slane %v122_v14, 1 }
  0x33   :  { %258 = vrot.lane.b32.xlu1 %v255_v51, %s413_s25  ;;  %v214_v27 = vstv %s346_s15  ;;  %v169_v29 = vstv %s558_s16  ;;  %v229_v31 = vrot.slane %v225_v19, 1  ;;  %v163_v36 = vstv %s564_s17 }
  0x34   :  { %256 = vrot.lane.b32.xlu0 %v254_v52, %s413_s25  ;;  %v221_v30 = vadd.f32 %v219_v18, %v214_v27  ;;  %v228_v33 = vrot.slane %v224_v24, 1  ;;  %v170_v38 = vmul.f32 %v169_v29, %v492_v13  ;;  %v271_v39 = vstv %s566_s18 }
  0x35   :  { %v115_v7 = vstv %s114_s6  ;;  %v165_v42 = vmul.f32 %v163_v36, %v487_v12  ;;  %v164_v46 = vmul.f32 %v163_v36, %v492_v13  ;;  %v265_v47 = vstv %s572_s19 }
  0x36   :  { %v117_v9 = vmul.f32 %v115_v7, %v466_v3  ;;  %v116_v11 = vmul.f32 %v115_v7, %v461_v2  ;;  %v220_v3 = vadd.f32 %v218_v23, %v214_v27  ;;  %v171_v2 = vmul.f32 %v169_v29, %v487_v12 }
  0x37   :  { %188 = vrot.lane.b32.xlu1 %v183_v54, %s413_s25  ;;  %v233_v40 = vadd.f32 %v229_v31, %v221_v30  ;;  %v273_v51 = vmul.f32 %v271_v39, %v487_v12  ;;  %v174_v53 = vrot.slane %v170_v38, 1  ;;  %v272_v54 = vmul.f32 %v271_v39, %v492_v13 }
  0x38   :  { %186 = vrot.lane.b32.xlu0 %v182_v55, %s413_s25  ;;  %v119_v20 = vadd.f32 %v117_v9, %v112_v17  ;;  %v118_v25 = vadd.f32 %v116_v11, %v112_v17  ;;  %v232_v43 = vadd.f32 %v228_v33, %v220_v3  ;;  %v175_v50 = vrot.slane %v171_v2, 1 }
  0x39   :  { %v267_v57 = vmul.f32 %v265_v47, %v487_v12  ;;  %v266_v61 = vmul.f32 %v265_v47, %v492_v13 }
  0x3a   :  { %v131_v32 = vadd.f32 %v127_v21, %v119_v20  ;;  %v130_v34 = vadd.f32 %v126_v26, %v118_v25 }
  0x3b   :  { %290 = vrot.lane.b32.xlu1 %v285_v58, %s413_s25 }
  0x3c   :  { %288 = vrot.lane.b32.xlu0 %v284_v60, %s413_s25 }
  0x3f   :  { %204 = vrot.lane.b32.xlu1 %v201_v63, %s413_s25 }
  0x40   :  { %202 = vrot.lane.b32.xlu0 %v200_v1, %s413_s25  ;;  %v277_v1 = vrot.slane %v273_v51, 1 }
  0x43   :  { %306 = vrot.lane.b32.xlu1 %v303_v5, %s413_s25 }
  0x44   :  { %304 = vrot.lane.b32.xlu0 %v302_v6, %s413_s25  ;;  %v276_v6 = vrot.slane %v272_v54, 1 }
  0x99   :  { %v241_v22 = vpop.permute.xlu1 %240 }
  0x9a   :  { %v139_v28 = vpop.permute.xlu0 %138  ;;  %v246_v58 = vadd.f32 %v241_v22, %v232_v43 }
  0x9b   :  { %v144_v44 = vadd.f32 %v139_v28, %v130_v34 }
  0x9d   :  { %v243_v35 = vpop.permute.xlu1 %242 }
  0x9e   :  { %v141_v37 = vpop.permute.xlu0 %140  ;;  %v247_v55 = vadd.f32 %v243_v35, %v233_v40 }
  0x9f   :  { %v145_v41 = vadd.f32 %v141_v37, %v131_v32 }
  0xa1   :  { %v157_v45 = vpop.permute.xlu1 %156 }
  0xa2   :  { %v161_v48 = vadd.f32 %v157_v45, %v145_v41  ;;  %v155_v49 = vpop.permute.xlu0 %154 }
  0xa3   :  { %v160_v52 = vadd.f32 %v155_v49, %v144_v44 }
  0xa4   :  { %v167_v56 = vadd.f32 %v165_v42, %v161_v48 }
  0xa5   :  { %v166_v59 = vadd.f32 %v164_v46, %v160_v52  ;;  %v259_v60 = vpop.permute.xlu1 %258 }
  0xa6   :  { %v263_v62 = vadd.f32 %v259_v60, %v247_v55  ;;  %v257_v63 = vpop.permute.xlu0 %256  ;;  %v179_v0 = vadd.f32 %v175_v50, %v167_v56 }
  0xa7   :  { %v262_v4 = vadd.f32 %v257_v63, %v246_v58  ;;  %v178_v5 = vadd.f32 %v174_v53, %v166_v59 }
  0xa8   :  { %v269_v7 = vadd.f32 %v267_v57, %v263_v62 }
  0xa9   :  { %v268_v8 = vadd.f32 %v266_v61, %v262_v4  ;;  %v189_v9 = vpop.permute.xlu1 %188 }
  0xaa   :  { %v187_v10 = vpop.permute.xlu0 %186  ;;  %v281_v11 = vadd.f32 %v277_v1, %v269_v7  ;;  %v193_v16 = vadd.f32 %v189_v9, %v179_v0 }
  0xab   :  { %v280_v14 = vadd.f32 %v276_v6, %v268_v8  ;;  %v192_v17 = vadd.f32 %v187_v10, %v178_v5 }
  0xad   :  { %v291_v15 = vpop.permute.xlu1 %290 }
  0xae   :  { %v289_v12 = vpop.permute.xlu0 %288  ;;  %v295_v21 = vadd.f32 %v291_v15, %v281_v11 }
  0xaf   :  { %v294_v22 = vadd.f32 %v289_v12, %v280_v14 }
  0xb1   :  { %v205_v18 = vpop.permute.xlu1 %204 }
  0xb2   :  { %v209_v13 = vadd.f32 %v205_v18, %v193_v16  ;;  %v203_v19 = vpop.permute.xlu0 %202 }
  0xb3   :  { %v208_v20 = vadd.f32 %v203_v19, %v192_v17 }
  0xb4   :  { %212 = vst.msk [vmem:[#allocation7 + $0x2] sm:$0x1] %vm210_vm1, %v209_v13 }
  0xb5   :  { %211 = vst.msk [vmem:[#allocation7] sm:$0x1] %vm210_vm1, %v208_v20  ;;  %v307_v23 = vpop.permute.xlu1 %306 }
  0xb6   :  { %v311_v24 = vadd.f32 %v307_v23, %v295_v21  ;;  %v305_v25 = vpop.permute.xlu0 %304 }
  0xb7   :  { %v310_v26 = vadd.f32 %v305_v25, %v294_v22 }
  0xb8   :  { %314 = vst.msk [vmem:[#allocation7 + $0x3] sm:$0x1] %vm210_vm1, %v311_v24 }
  0xb9   :  { %313 = vst.msk [vmem:[#allocation7 + $0x1] sm:$0x1] %vm210_vm1, %v310_v26 }
  0xba   :  { %396 = shalt.err (!%p393_p0)
}
  0xbb   :  { %s415_s0 = smov 16   ;;  %s416_s23 = smov 1  }
  0xbc   :  { %326 = dma.vmem_to_hbm [thread:$0]  %s321_s21, 64, %s598_s5, [#allocation3], %s415_s0, %s415_s0, %s416_s23  }
  0xbd   :  { %409 = dma.done.wait [#allocation3], 64  }
  0xbe   :  { %410 = vsyncadd [#allocation3], 4294967232 }
  0xbf   :  { %334 = vsyncpa [#allocation3], 1 }
  0xc0   :  { %335 = vsyncpa [#allocation4], 1 }
  0xc1   :  { %336 = vsyncpa [#allocation6], 1 }

</bundles_post_ra>
